<compile_context>
chip_gen: v6e
topology: v6e:2x2x1
jax: 0.10.0
libtpu: 0.0.40
codegen_flags: <defaults>
</compile_context>

<pallas_src>
import functools

import jax
import jax.numpy as jnp
from jax.experimental import pallas as pl
from jax.experimental.pallas import tpu as pltpu

_LANE = 128
_SUBLANE = 8


def _round_up(x, m):
    return (x + m - 1) // m * m


def _vmem_capacity_bytes():
    try:
        return int(pltpu.get_tpu_info().vmem_capacity_bytes)
    except Exception:
        return 64 * 1024 * 1024  # conservative fallback: v7x per-TensorCore VMEM


def _mlp_kernel(x_ref, w1_ref, b1_ref, w2_ref, b2_ref, w3_ref, b3_ref, o_ref):
    cdt = w1_ref.dtype
    # Exact f32 mode: force full-precision MXU passes; bf16 perf mode: default precision.
    prec = jax.lax.Precision.HIGHEST if cdt == jnp.float32 else None
    x = x_ref[...].astype(cdt)  # in-kernel cast -> no wrapper HBM pass over x
    # Layer 1 + ReLU (accumulation always f32 on the MXU; bias/ReLU f32 on the VPU, v5e-safe).
    h = jnp.dot(x, w1_ref[...], preferred_element_type=jnp.float32, precision=prec)
    h = jnp.maximum(h + b1_ref[...], 0.0)
    # Layer 2 + ReLU.
    h = jnp.dot(h.astype(cdt), w2_ref[...], preferred_element_type=jnp.float32, precision=prec)
    h = jnp.maximum(h + b2_ref[...], 0.0)
    # Layer 3 (no activation).
    out = jnp.dot(h.astype(cdt), w3_ref[...], preferred_element_type=jnp.float32, precision=prec)
    o_ref[...] = (out + b3_ref[...]).astype(o_ref.dtype)


def prepare_params(w1, b1, w2, b2, w3, b3, compute_dtype=jnp.bfloat16):
    """Pad hidden/output feature dims to 128-multiples and cast weights to the compute dtype.

    Run ONCE at init (weights stored [in, out]); biases stay f32 for the VPU bias-add/ReLU.
    Returns ((w1p, b1p, w2p, b2p, w3p, b3p), output_size).
    """
    in_size, hidden = w1.shape
    out_size = w3.shape[1]
    h_p = _round_up(hidden, _LANE)
    out_p = _round_up(out_size, _LANE)
    cdt = jnp.dtype(compute_dtype)

    w1p = jnp.zeros((in_size, h_p), cdt).at[:, :hidden].set(w1.astype(cdt))
    w2p = jnp.zeros((h_p, h_p), cdt).at[:hidden, :hidden].set(w2.astype(cdt))
    w3p = jnp.zeros((h_p, out_p), cdt).at[:hidden, :out_size].set(w3.astype(cdt))
    b1p = jnp.zeros((1, h_p), jnp.float32).at[0, :hidden].set(b1.reshape(-1).astype(jnp.float32))
    b2p = jnp.zeros((1, h_p), jnp.float32).at[0, :hidden].set(b2.reshape(-1).astype(jnp.float32))
    b3p = jnp.zeros((1, out_p), jnp.float32).at[0, :out_size].set(b3.reshape(-1).astype(jnp.float32))
    return (w1p, b1p, w2p, b2p, w3p, b3p), out_size


def _choose_block_b(B, block_b):
    bb = min(block_b, _round_up(B, _SUBLANE))
    # Keep >= 2 grid steps when each core still gets a full MXU-M (128) tile: v7x has two
    # TensorCores and dimension_semantics=('parallel',) shards batch tiles across them.
    if -(-B // bb) < 2 and B >= 2 * _LANE:
        bb = _round_up(-(-B // 2), _SUBLANE)
    return bb


@functools.partial(jax.jit, static_argnames=("out_size", "block_b"))
def fwd_neural_net(x, params, *, out_size, block_b=256):
    """x: [B, input_size]; params from prepare_params() -> [B, output_size] (x.dtype)."""
    w1p, b1p, w2p, b2p, w3p, b3p = params
    B, in_size = x.shape
    h_p = w1p.shape[1]
    out_p = w3p.shape[1]

    bb = _choose_block_b(B, block_b)
    grid = (pl.cdiv(B, bb),)  # ragged last block: Pallas masks out-of-bounds writes

    wb = w1p.dtype.itemsize
    xb = x.dtype.itemsize
    ob = x.dtype.itemsize
    weight_elems = in_size * h_p + h_p * h_p + h_p * out_p
    bias_bytes = 4 * (2 * h_p + out_p)

    # Advisory cost estimate for XLA scheduling around the custom call.
    flops = 2 * B * weight_elems
    bytes_accessed = xb * B * in_size + wb * weight_elems + bias_bytes + ob * B * out_p

    # VMEM budget: 2x (double-buffered) x/out tiles + 1x (Buffered(1)) resident weights/biases,
    # +20% headroom, clamped to 90% of physical VMEM (64 MiB on v7x, 128 MiB on v5e/v6e).
    tile_bytes = 2 * bb * (in_size * xb + out_p * ob)
    resident_bytes = wb * weight_elems + bias_bytes
    vmem_cap = _vmem_capacity_bytes()
    vmem_limit = int(min(max(int(1.2 * (tile_bytes + resident_bytes)), 32 * 1024 * 1024),
                         int(0.9 * vmem_cap)))

    resident = dict(pipeline_mode=pl.Buffered(1))  # grid-invariant blocks: single buffer

    out_padded = pl.pallas_call(
        _mlp_kernel,
        out_shape=jax.ShapeDtypeStruct((B, out_p), x.dtype),
        grid_spec=pltpu.PrefetchScalarGridSpec(
            num_scalar_prefetch=0,
            grid=grid,
            in_specs=[
                pl.BlockSpec((bb, in_size), lambda i: (i, 0)),              # x tile (unpadded K)
                pl.BlockSpec((in_size, h_p), lambda i: (0, 0), **resident),  # w1 (resident)
                pl.BlockSpec((1, h_p), lambda i: (0, 0), **resident),        # b1
                pl.BlockSpec((h_p, h_p), lambda i: (0, 0), **resident),      # w2
                pl.BlockSpec((1, h_p), lambda i: (0, 0), **resident),        # b2
                pl.BlockSpec((h_p, out_p), lambda i: (0, 0), **resident),    # w3
                pl.BlockSpec((1, out_p), lambda i: (0, 0), **resident),      # b3
            ],
            out_specs=pl.BlockSpec((bb, out_p), lambda i: (i, 0)),          # lane-dense store
        ),
        compiler_params=pltpu.CompilerParams(
            dimension_semantics=("parallel",),  # independent batch tiles -> megacore sharding
            vmem_limit_bytes=vmem_limit,
        ),
        cost_estimate=pl.CostEstimate(
            flops=flops, transcendentals=0, bytes_accessed=bytes_accessed),
    )(x, w1p, b1p, w2p, b2p, w3p, b3p)

    if out_size != out_p:
        return out_padded[:, :out_size]
    return out_padded


def _init_linear(key, in_features, out_features, dtype=jnp.float32):
    """Mimic torch.nn.Linear default init: U(-1/sqrt(in), 1/sqrt(in)); weight stored [in, out]."""
    kw, kb = jax.random.split(key)
    bound = 1.0 / float(in_features) ** 0.5
    w = jax.random.uniform(kw, (in_features, out_features), dtype, -bound, bound)
    b = jax.random.uniform(kb, (out_features,), dtype, -bound, bound)
    return w, b


if __name__ == "__main__":
    # Small shapes consistent with the module; batch=256 so the block splitter gives 2 grid
    # steps of 128 rows each (exercises both TensorCores on v7x) while staying tiny.
    batch, input_size, hidden_size, output_size = 256, 32, 32, 16

    key = jax.random.PRNGKey(0)
    kx, k1, k2, k3 = jax.random.split(key, 4)

    x = jax.random.normal(kx, (batch, input_size), jnp.float32)
    w1, b1 = _init_linear(k1, input_size, hidden_size)
    w2, b2 = _init_linear(k2, hidden_size, hidden_size)
    w3, b3 = _init_linear(k3, hidden_size, output_size)

    # Pure-JAX reference (same math as the PyTorch forward).
    ref = jnp.maximum(x @ w1 + b1, 0.0)
    ref = jnp.maximum(ref @ w2 + b2, 0.0)
    ref = ref @ w3 + b3

    # 1) Default perf path: bf16 MXU operands, f32 accumulation (looser tolerance).
    params_bf16, out_size = prepare_params(w1, b1, w2, b2, w3, b3,
                                           compute_dtype=jnp.bfloat16)
    out_bf16 = jax.block_until_ready(fwd_neural_net(x, params_bf16, out_size=out_size))
    assert out_bf16.shape == (batch, output_size)
    assert jnp.allclose(out_bf16, ref, atol=5e-2, rtol=5e-2)

    # 2) Opt-in exact f32 path (Precision.HIGHEST matmuls): matches module semantics tightly.
    params_f32, _ = prepare_params(w1, b1, w2, b2, w3, b3, compute_dtype=jnp.float32)
    out_f32 = jax.block_until_ready(fwd_neural_net(x, params_f32, out_size=out_size))
    assert out_f32.shape == (batch, output_size)
    assert jnp.allclose(out_f32, ref, atol=1e-5, rtol=1e-5)

    # 3) Ragged batch: cdiv grid + masked last-block writes (no wrapper batch padding/slicing).
    out_odd = jax.block_until_ready(fwd_neural_net(x[:10], params_f32, out_size=out_size))
    assert out_odd.shape == (10, output_size)
    assert jnp.allclose(out_odd, ref[:10], atol=1e-5, rtol=1e-5)

    print("KERNEL_OK")
</pallas_src>

<mosaic_0001>
module attributes {stable_mosaic.version = 11 : i64} {
  func.func @_mlp_kernel(%arg0: i32, %arg1: memref<128x32xf32, #tpu.memory_space<vmem>>, %arg2: memref<32x128xbf16, #tpu.memory_space<vmem>>, %arg3: memref<1x128xf32, #tpu.memory_space<vmem>>, %arg4: memref<128x128xbf16, #tpu.memory_space<vmem>>, %arg5: memref<1x128xf32, #tpu.memory_space<vmem>>, %arg6: memref<128x128xbf16, #tpu.memory_space<vmem>>, %arg7: memref<1x128xf32, #tpu.memory_space<vmem>>, %arg8: memref<128x128xf32, #tpu.memory_space<vmem>>) attributes {dimension_semantics = [#tpu.dimension_semantics<parallel>], iteration_bounds = array<i64: 2>, scalar_prefetch = 0 : i64, scratch_operands = 0 : i64, tpu.core_type = #tpu.core_type<tc>, window_params = [{transform_indices = @transform_0, window_bounds = array<i64: 128, 32>}, {pipeline_mode = #tpu.pipeline_mode<synchronous>, transform_indices = @transform_1, window_bounds = array<i64: 32, 128>}, {pipeline_mode = #tpu.pipeline_mode<synchronous>, transform_indices = @transform_2, window_bounds = array<i64: 1, 128>}, {pipeline_mode = #tpu.pipeline_mode<synchronous>, transform_indices = @transform_3, window_bounds = array<i64: 128, 128>}, {pipeline_mode = #tpu.pipeline_mode<synchronous>, transform_indices = @transform_4, window_bounds = array<i64: 1, 128>}, {pipeline_mode = #tpu.pipeline_mode<synchronous>, transform_indices = @transform_5, window_bounds = array<i64: 128, 128>}, {pipeline_mode = #tpu.pipeline_mode<synchronous>, transform_indices = @transform_6, window_bounds = array<i64: 1, 128>}, {transform_indices = @transform_7, window_bounds = array<i64: 128, 128>}]} {
    %c0 = arith.constant 0 : index
    %c0_0 = arith.constant 0 : index
    %0 = vector.load %arg1[%c0, %c0_0] : memref<128x32xf32, #tpu.memory_space<vmem>>, vector<128x32xf32>
    %1 = arith.truncf %0 : vector<128x32xf32> to vector<128x32xbf16>
    %c0_1 = arith.constant 0 : index
    %c0_2 = arith.constant 0 : index
    %2 = vector.load %arg2[%c0_1, %c0_2] : memref<32x128xbf16, #tpu.memory_space<vmem>>, vector<32x128xbf16>
    %cst = arith.constant dense<0.000000e+00> : vector<128x128xf32>
    %3 = tpu.matmul %1, %2, %cst {dimension_numbers = #tpu.dot_dimension_numbers<[1], [0], [0], [1], [0, 0, 1, 1], [], []>} : vector<128x32xbf16>, vector<32x128xbf16>, vector<128x128xf32> -> vector<128x128xf32>
    %c0_3 = arith.constant 0 : index
    %c0_4 = arith.constant 0 : index
    %4 = vector.load %arg3[%c0_3, %c0_4] : memref<1x128xf32, #tpu.memory_space<vmem>>, vector<1x128xf32>
    %5 = vector.broadcast %4 : vector<1x128xf32> to vector<128x128xf32>
    %6 = arith.addf %3, %5 : vector<128x128xf32>
    %cst_5 = arith.constant 0.000000e+00 : f32
    %7 = vector.broadcast %cst_5 : f32 to vector<128x128xf32>
    %8 = arith.maximumf %6, %7 : vector<128x128xf32>
    %9 = arith.truncf %8 : vector<128x128xf32> to vector<128x128xbf16>
    %c0_6 = arith.constant 0 : index
    %c0_7 = arith.constant 0 : index
    %10 = vector.load %arg4[%c0_6, %c0_7] : memref<128x128xbf16, #tpu.memory_space<vmem>>, vector<128x128xbf16>
    %cst_8 = arith.constant dense<0.000000e+00> : vector<128x128xf32>
    %11 = tpu.matmul %9, %10, %cst_8 {dimension_numbers = #tpu.dot_dimension_numbers<[1], [0], [0], [1], [0, 0, 1, 1], [], []>} : vector<128x128xbf16>, vector<128x128xbf16>, vector<128x128xf32> -> vector<128x128xf32>
    %c0_9 = arith.constant 0 : index
    %c0_10 = arith.constant 0 : index
    %12 = vector.load %arg5[%c0_9, %c0_10] : memref<1x128xf32, #tpu.memory_space<vmem>>, vector<1x128xf32>
    %13 = vector.broadcast %12 : vector<1x128xf32> to vector<128x128xf32>
    %14 = arith.addf %11, %13 : vector<128x128xf32>
    %cst_11 = arith.constant 0.000000e+00 : f32
    %15 = vector.broadcast %cst_11 : f32 to vector<128x128xf32>
    %16 = arith.maximumf %14, %15 : vector<128x128xf32>
    %17 = arith.truncf %16 : vector<128x128xf32> to vector<128x128xbf16>
    %c0_12 = arith.constant 0 : index
    %c0_13 = arith.constant 0 : index
    %18 = vector.load %arg6[%c0_12, %c0_13] : memref<128x128xbf16, #tpu.memory_space<vmem>>, vector<128x128xbf16>
    %cst_14 = arith.constant dense<0.000000e+00> : vector<128x128xf32>
    %19 = tpu.matmul %17, %18, %cst_14 {dimension_numbers = #tpu.dot_dimension_numbers<[1], [0], [0], [1], [0, 0, 1, 1], [], []>} : vector<128x128xbf16>, vector<128x128xbf16>, vector<128x128xf32> -> vector<128x128xf32>
    %c0_15 = arith.constant 0 : index
    %c0_16 = arith.constant 0 : index
    %20 = vector.load %arg7[%c0_15, %c0_16] : memref<1x128xf32, #tpu.memory_space<vmem>>, vector<1x128xf32>
    %21 = vector.broadcast %20 : vector<1x128xf32> to vector<128x128xf32>
    %22 = arith.addf %19, %21 : vector<128x128xf32>
    %c0_17 = arith.constant 0 : index
    %c0_18 = arith.constant 0 : index
    %23 = vector.load %arg8[%c0_17, %c0_18] : memref<128x128xf32, #tpu.memory_space<vmem>>, vector<128x128xf32>
    tpu.vector_store %arg8[%c0_17, %c0_18], %22 {strides = array<i32>} : memref<128x128xf32, #tpu.memory_space<vmem>>, vector<128x128xf32>,
    return
  }
  func.func @transform_0(%arg0: i32) -> (i32, i32) {
    %c0_i32 = arith.constant 0 : i32
    %c0_i32_0 = arith.constant 0 : i32
    return %arg0, %c0_i32 : i32, i32
  }
  func.func @transform_1(%arg0: i32) -> (i32, i32) {
    %c0_i32 = arith.constant 0 : i32
    %c0_i32_0 = arith.constant 0 : i32
    %c0_i32_1 = arith.constant 0 : i32
    return %c0_i32, %c0_i32_0 : i32, i32
  }
  func.func @transform_2(%arg0: i32) -> (i32, i32) {
    %c0_i32 = arith.constant 0 : i32
    %c0_i32_0 = arith.constant 0 : i32
    %c0_i32_1 = arith.constant 0 : i32
    return %c0_i32, %c0_i32_0 : i32, i32
  }
  func.func @transform_3(%arg0: i32) -> (i32, i32) {
    %c0_i32 = arith.constant 0 : i32
    %c0_i32_0 = arith.constant 0 : i32
    %c0_i32_1 = arith.constant 0 : i32
    return %c0_i32, %c0_i32_0 : i32, i32
  }
  func.func @transform_4(%arg0: i32) -> (i32, i32) {
    %c0_i32 = arith.constant 0 : i32
    %c0_i32_0 = arith.constant 0 : i32
    %c0_i32_1 = arith.constant 0 : i32
    return %c0_i32, %c0_i32_0 : i32, i32
  }
  func.func @transform_5(%arg0: i32) -> (i32, i32) {
    %c0_i32 = arith.constant 0 : i32
    %c0_i32_0 = arith.constant 0 : i32
    %c0_i32_1 = arith.constant 0 : i32
    return %c0_i32, %c0_i32_0 : i32, i32
  }
  func.func @transform_6(%arg0: i32) -> (i32, i32) {
    %c0_i32 = arith.constant 0 : i32
    %c0_i32_0 = arith.constant 0 : i32
    %c0_i32_1 = arith.constant 0 : i32
    return %c0_i32, %c0_i32_0 : i32, i32
  }
  func.func @transform_7(%arg0: i32) -> (i32, i32) {
    %c0_i32 = arith.constant 0 : i32
    %c0_i32_0 = arith.constant 0 : i32
    return %arg0, %c0_i32 : i32, i32
  }
}

</mosaic_0001>

<bundles_post_ra>
// kernel: fwd_neural_net.1
= control target key start
LH: loop header
LB: loop body
LE: loop exit
PB: predicated region body
PF: predicated region fallthrough
CT: control target
= control target key end

     0   :  { %s1148_s24 = smov 0   ;;  %s1279_s0 = inlined_call_operand.vmem [shape: f32[256,32], index: 0, kind: input, shape index: {}]   ;;  %s1280_s1 = inlined_call_operand.vmem [shape: bf16[32,128], index: 1, kind: input, shape index: {}]   ;;  %s1281_s2 = inlined_call_operand.vmem [shape: f32[1,128], index: 2, kind: input, shape index: {}]   ;;  %s1282_s3 = inlined_call_operand.vmem [shape: bf16[128,128], index: 3, kind: input, shape index: {}]   ;;  %s1283_s4 = inlined_call_operand.vmem [shape: f32[1,128], index: 4, kind: input, shape index: {}]   ;;  %s1284_s5 = inlined_call_operand.vmem [shape: bf16[128,128], index: 5, kind: input, shape index: {}]   ;;  %s1285_s6 = inlined_call_operand.vmem [shape: f32[1,128], index: 6, kind: input, shape index: {}]   ;;  %s1286_s7 = inlined_call_operand.vmem [shape: f32[256,128], index: 7, kind: output, shape index: {}]  }
   0x1 LB: > { %s908_s25 = sadd.s32 4294967295, %s1106_s24   ;;  %p912_p0 = scmp.ge.s32.totalorder %s1106_s24, 1  ;;  %s1106_s24 = sphi %s1148_s24, %s17_s24  }
   0x2   : > { %p238_p1 = scmp.lt.s32.totalorder %s1106_s24, 3 }
   0x4   : > { %p239_p2 = pnand %p912_p0, %p238_p1 }
   0x5   : > { %s913_s28 = sshll.u32 (!%p239_p2), %s908_s25, 4 }
   0x6   : > { %242 = sbr.rel (%p239_p2) target bundleno = 658 (0x292), region = 48  ;;  %p271_p3 = scmp.lt.s32.totalorder (!%p239_p2), %s913_s28, 31 }
   0xb   : > { %v1082_v0 = vld [vmem:[%s1280_s1 + $0x8] sm:$0xff]   ;;  %v1083_v1 = vld [vmem:[%s1280_s1] sm:$0xff]   ;;  %v1084_v2 = vld [vmem:[%s1282_s3 + $0x38] sm:$0xff]   ;;  %s1288_s28 = smov (!%p271_p3, %s913_s28), 31  ;;  %vm330_vm0 = vcmask 261120  }
   0xc   : > { %990 = vmatprep.subr.bf16.mxu0 %v1082_v0  ;;  %v1085_v3 = vld [vmem:[%s1282_s3 + $0x30] sm:$0xff]   ;;  %1010 = vmatprep.subr.bf16.mxu1 %v1084_v2  ;;  %s914_s12 = sshll.u32 %s1288_s28, 3  ;;  %v1086_v4 = vld [vmem:[%s1282_s3 + $0x28] sm:$0xff]   ;;  %v1087_v14 = vld [vmem:[%s1282_s3 + $0x20] sm:$0xff]  }
   0xd   : > { %991 = vmatpush3.bf16.msra.mxu0 %v1082_v0  ;;  %1011 = vmatpush3.bf16.msra.mxu1 %v1084_v2  ;;  %s1176_s15 = scalar_lea.vmem %s1279_s0, %s914_s12  ;;  %v1088_v19 = vld [vmem:[%s1282_s3 + $0x18] sm:$0xff]   ;;  %v1089_v31 = vld [vmem:[%s1282_s3 + $0x10] sm:$0xff]   ;;  %v1090_v32 = vld [vmem:[%s1282_s3 + $0x8] sm:$0xff]   ;;  %s1258_s11 = scalar_lea.vmem %s1286_s7, %s914_s12 }
   0xe   : > { %992 = vmatprep.subr.bf16.mxu0 %v1083_v1  ;;  %1012 = vmatprep.subr.bf16.mxu1 %v1085_v3  ;;  %v283_v5 = vld [vmem:[%s1176_s15] sm:$0xff]  ;;  %v284_v6 = vld [vmem:[%s1176_s15 + $0x8] sm:$0xff]  ;;  %v285_v7 = vld [vmem:[%s1176_s15 + $0x10] sm:$0xff] }
   0xf   : > { %v299_v8 = vpack.c.bf16 %v284_v6, %v283_v5  ;;  %v286_v9 = vld [vmem:[%s1176_s15 + $0x18] sm:$0xff]  ;;  %v287_v10 = vld [vmem:[%s1176_s15 + $0x20] sm:$0xff]  ;;  %v288_v11 = vld [vmem:[%s1176_s15 + $0x28] sm:$0xff] }
  0x10   : > { %v300_v12 = vpack.c.bf16 %v286_v9, %v285_v7  ;;  %v301_v13 = vpack.c.bf16 %v288_v11, %v287_v10  ;;  %v289_v15 = vld [vmem:[%s1176_s15 + $0x30] sm:$0xff]  ;;  %v290_v16 = vld [vmem:[%s1176_s15 + $0x38] sm:$0xff]  ;;  %v291_v17 = vld [vmem:[%s1176_s15 + $0x40] sm:$0xff] }
  0x11   : > { %993 = vmatpush3.bf16.msra.mxu0 %v1083_v1  ;;  %1013 = vmatpush3.bf16.msra.mxu1 %v1085_v3  ;;  %v292_v18 = vld [vmem:[%s1176_s15 + $0x48] sm:$0xff]  ;;  %v302_v20 = vpack.c.bf16 %v290_v16, %v289_v15  ;;  %v293_v22 = vld [vmem:[%s1176_s15 + $0x50] sm:$0xff]  ;;  %v294_v23 = vld [vmem:[%s1176_s15 + $0x58] sm:$0xff] }
  0x12   : > { %994 = vmatprep.mubr.msk.bf16.mxu0 %vm330_vm0, %v299_v8  ;;  %1014 = vmatprep.subr.bf16.mxu1 %v1086_v4  ;;  %v303_v21 = vpack.c.bf16 %v292_v18, %v291_v17  ;;  %v295_v24 = vld [vmem:[%s1176_s15 + $0x60] sm:$0xff]  ;;  %v296_v25 = vld [vmem:[%s1176_s15 + $0x68] sm:$0xff]  ;;  %v304_v26 = vpack.c.bf16 %v294_v23, %v293_v22  ;;  %v297_v28 = vld [vmem:[%s1176_s15 + $0x70] sm:$0xff] }
  0x13   : > { %v305_v27 = vpack.c.bf16 %v296_v25, %v295_v24  ;;  %v298_v29 = vld [vmem:[%s1176_s15 + $0x78] sm:$0xff]  ;;  %v1091_v33 = vld [vmem:[%s1282_s3] sm:$0xff]   ;;  %v1093_v35 = vld [vmem:[%s1284_s5 + $0x30] sm:$0xff]  }
  0x14   : > { %995 = vmatmul.mubr.msk.bf16.vlgmr.msra.gmra.mxu0 %vm330_vm0, %v300_v12  ;;  %v306_v30 = vpack.c.bf16 %v298_v29, %v297_v28  ;;  %v1092_v34 = vld [vmem:[%s1284_s5 + $0x38] sm:$0xff]   ;;  %v1094_v36 = vld [vmem:[%s1284_s5 + $0x28] sm:$0xff]   ;;  %v1095_v37 = vld [vmem:[%s1284_s5 + $0x20] sm:$0xff]  }
  0x15   : > { %998 = vmatprep.mubr.msk.bf16.mxu0 %vm330_vm0, %v301_v13  ;;  %1015 = vmatpush3.bf16.msra.mxu1 %v1086_v4  ;;  %v1096_v38 = vld [vmem:[%s1284_s5 + $0x18] sm:$0xff]   ;;  %v917_v41 = vld [vmem:[%s1281_s2] ss:$0 sm:$0xff] }
  0x16   : > { %1016 = vmatprep.subr.bf16.mxu1 %v1087_v14  ;;  %1042 = vmatprep.subr.bf16.mxu0 %v1092_v34 }
  0x17   : > { %1043 = vmatpush3.bf16.msra.mxu0 %v1092_v34  ;;  %v1099_v34 = vld [vmem:[%s1284_s5] sm:$0xff]  }
  0x18   : > { %1044 = vmatprep.subr.bf16.mxu0 %v1093_v35 }
  0x19   : > { %1017 = vmatpush3.bf16.msra.mxu1 %v1087_v14 }
  0x1a   : > { %1018 = vmatprep.subr.bf16.mxu1 %v1088_v19 }
  0x1b   : > { %1045 = vmatpush3.bf16.msra.mxu0 %v1093_v35 }
  0x1c   : > { %999 = vmatmul.mubr.msk.bf16.gmra.mxu0 %vm330_vm0, %v302_v20  ;;  %1046 = vmatprep.subr.bf16.mxu0 %v1094_v36 }
  0x1d   : > { %1002 = vmatprep.mubr.msk.bf16.mxu0 %vm330_vm0, %v303_v21  ;;  %1019 = vmatpush3.bf16.msra.mxu1 %v1088_v19 }
  0x1e   : > { %1020 = vmatprep.subr.bf16.mxu1 %v1089_v31 }
  0x1f   : > { %1047 = vmatpush3.bf16.msra.mxu0 %v1094_v36 }
  0x20   : > { %1048 = vmatprep.subr.bf16.mxu0 %v1095_v37 }
  0x21   : > { %1021 = vmatpush3.bf16.msra.mxu1 %v1089_v31 }
  0x22   : > { %1022 = vmatprep.subr.bf16.mxu1 %v1090_v32 }
  0x23   : > { %1049 = vmatpush3.bf16.msra.mxu0 %v1095_v37  ;;  %v928_v37 = vld [vmem:[%s1283_s4] ss:$0 sm:$0xff] }
  0x24   : > { %1003 = vmatmul.mubr.msk.bf16.gmra.mxu0 %vm330_vm0, %v304_v26  ;;  %1050 = vmatprep.subr.bf16.mxu0 %v1096_v38 }
  0x25   : > { %1006 = vmatprep.mubr.msk.bf16.mxu0 %vm330_vm0, %v305_v27  ;;  %1023 = vmatpush3.bf16.msra.mxu1 %v1090_v32  ;;  %v1097_v32 = vld [vmem:[%s1284_s5 + $0x10] sm:$0xff]  }
  0x26   : > { %1024 = vmatprep.subr.bf16.mxu1 %v1091_v33 }
  0x27   : > { %1051 = vmatpush3.bf16.msra.mxu0 %v1096_v38 }
  0x28   : > { %1052 = vmatprep.subr.bf16.mxu0 %v1097_v32 }
  0x29   : > { %1025 = vmatpush3.bf16.msra.mxu1 %v1091_v33  ;;  %v1098_v33 = vld [vmem:[%s1284_s5 + $0x8] sm:$0xff]  }
  0x2b   : > { %1053 = vmatpush3.bf16.msra.mxu0 %v1097_v32 }
  0x2c   : > { %1007 = vmatmul.mubr.msk.bf16.gmra.mxu0 %vm330_vm0, %v306_v30  ;;  %1054 = vmatprep.subr.bf16.mxu0 %v1098_v33 }
  0x2f   : > { %1055 = vmatpush3.bf16.msra.mxu0 %v1098_v33 }
  0x30   : > { %1056 = vmatprep.subr.bf16.mxu0 %v1099_v34 }
  0x33   : > { %1057 = vmatpush3.bf16.msra.mxu0 %v1099_v34 }
  0xd4   : > { %v996_v39 = vpop.f32.mrf.mxu0 }
  0xd5   : > { %v398_v45 = vadd.f32 %v996_v39, %v917_v41 }
  0xd6   : > { %v389_v40 = vpop.f32.mrf.mxu0 }
  0xd7   : > { %v390_v43 = vadd.f32 %v917_v41, %v389_v40  ;;  %v454_v52 = vmax.f32 %v398_v45, 0.0 }
  0xd8   : > { %v997_v42 = vpop.f32.mrf.mxu0 }
  0xd9   : > { %v401_v44 = vadd.f32 %v997_v42, %v917_v41  ;;  %v452_v50 = vmax.f32 %v390_v43, 0.0 }
  0xda   : > { %v392_v46 = vpop.f32.mrf.mxu0 }
  0xdb   : > { %v393_v47 = vadd.f32 %v917_v41, %v392_v46  ;;  %v455_v48 = vmax.f32 %v401_v44, 0.0 }
  0xdc   : > { %v1000_v49 = vpop.f32.mrf.mxu0 }
  0xdd   : > { %v453_v51 = vmax.f32 %v393_v47, 0.0  ;;  %v469_v55 = vpack.c.bf16 %v455_v48, %v454_v52  ;;  %v414_v59 = vadd.f32 %v1000_v49, %v917_v41 }
  0xde   : > { %v405_v53 = vpop.f32.mrf.mxu0 }
  0xdf   : > { %v468_v54 = vpack.c.bf16 %v453_v51, %v452_v50  ;;  %v406_v57 = vadd.f32 %v917_v41, %v405_v53  ;;  %v458_v2 = vmax.f32 %v414_v59, 0.0 }
  0xe0   : > { %v1001_v56 = vpop.f32.mrf.mxu0 }
  0xe1   : > { %v417_v58 = vadd.f32 %v1001_v56, %v917_v41  ;;  %1026 = vmatprep.mubr.bf16.mxu1 %v468_v54  ;;  %v456_v0 = vmax.f32 %v406_v57, 0.0 }
  0xe2   : > { %v408_v60 = vpop.f32.mrf.mxu0  ;;  %1027 = vmatmul.mubr.bf16.vlgmr.msra.gmra.mxu1 %v469_v55 }
  0xe3   : > { %v409_v61 = vadd.f32 %v917_v41, %v408_v60  ;;  %v459_v62 = vmax.f32 %v417_v58, 0.0 }
  0xe4   : > { %v1004_v63 = vpop.f32.mrf.mxu0 }
  0xe5   : > { %v457_v1 = vmax.f32 %v409_v61, 0.0  ;;  %v471_v5 = vpack.c.bf16 %v459_v62, %v458_v2  ;;  %v430_v9 = vadd.f32 %v1004_v63, %v917_v41 }
  0xe6   : > { %v421_v3 = vpop.f32.mrf.mxu0 }
  0xe7   : > { %v470_v4 = vpack.c.bf16 %v457_v1, %v456_v0  ;;  %v422_v7 = vadd.f32 %v917_v41, %v421_v3  ;;  %v462_v16 = vmax.f32 %v430_v9, 0.0 }
  0xe8   : > { %v1005_v6 = vpop.f32.mrf.mxu0 }
  0xe9   : > { %v433_v8 = vadd.f32 %v1005_v6, %v917_v41  ;;  %1030 = vmatprep.mubr.bf16.mxu1 %v470_v4  ;;  %v460_v14 = vmax.f32 %v422_v7, 0.0 }
  0xea   : > { %v424_v10 = vpop.f32.mrf.mxu0  ;;  %1031 = vmatmul.mubr.bf16.gmra.mxu1 %v471_v5 }
  0xeb   : > { %v425_v11 = vadd.f32 %v917_v41, %v424_v10  ;;  %v463_v12 = vmax.f32 %v433_v8, 0.0 }
  0xec   : > { %v1008_v13 = vpop.f32.mrf.mxu0 }
  0xed   : > { %v461_v15 = vmax.f32 %v425_v11, 0.0  ;;  %v473_v19 = vpack.c.bf16 %v463_v12, %v462_v16  ;;  %v446_v23 = vadd.f32 %v1008_v13, %v917_v41 }
  0xee   : > { %v437_v17 = vpop.f32.mrf.mxu0 }
  0xef   : > { %v472_v18 = vpack.c.bf16 %v461_v15, %v460_v14  ;;  %v438_v21 = vadd.f32 %v917_v41, %v437_v17  ;;  %v466_v29 = vmax.f32 %v446_v23, 0.0 }
  0xf0   : > { %v1009_v20 = vpop.f32.mrf.mxu0 }
  0xf1   : > { %v449_v22 = vadd.f32 %v1009_v20, %v917_v41  ;;  %1034 = vmatprep.mubr.bf16.mxu1 %v472_v18  ;;  %v464_v27 = vmax.f32 %v438_v21, 0.0 }
  0xf2   : > { %v440_v24 = vpop.f32.mrf.mxu0  ;;  %1035 = vmatmul.mubr.bf16.gmra.mxu1 %v473_v19 }
  0xf3   : > { %v441_v25 = vadd.f32 %v917_v41, %v440_v24  ;;  %v467_v26 = vmax.f32 %v449_v22, 0.0 }
  0xf5   : > { %v465_v28 = vmax.f32 %v441_v25, 0.0  ;;  %v475_v31 = vpack.c.bf16 %v467_v26, %v466_v29 }
  0xf7   : > { %v474_v30 = vpack.c.bf16 %v465_v28, %v464_v27  ;;  %v937_v28 = vld [vmem:[%s1285_s6] ss:$0 sm:$0xff] }
  0xf9   : > { %1038 = vmatprep.mubr.bf16.mxu1 %v474_v30 }
  0xfa   : > { %1039 = vmatmul.mubr.bf16.gmra.mxu1 %v475_v31 }
 0x1a2   : > { %v1028_v35 = vpop.f32.mrf.mxu1 }
 0x1a3   : > { %v590_v41 = vadd.f32 %v1028_v35, %v928_v37 }
 0x1a4   : > { %v581_v36 = vpop.f32.mrf.mxu1 }
 0x1a5   : > { %v582_v39 = vadd.f32 %v928_v37, %v581_v36  ;;  %v646_v48 = vmax.f32 %v590_v41, 0.0 }
 0x1a6   : > { %v1029_v38 = vpop.f32.mrf.mxu1 }
 0x1a7   : > { %v593_v40 = vadd.f32 %v1029_v38, %v928_v37  ;;  %v644_v46 = vmax.f32 %v582_v39, 0.0 }
 0x1a8   : > { %v584_v42 = vpop.f32.mrf.mxu1 }
 0x1a9   : > { %v585_v43 = vadd.f32 %v928_v37, %v584_v42  ;;  %v647_v44 = vmax.f32 %v593_v40, 0.0 }
 0x1aa   : > { %v1032_v45 = vpop.f32.mrf.mxu1 }
 0x1ab   : > { %v645_v47 = vmax.f32 %v585_v43, 0.0  ;;  %v661_v51 = vpack.c.bf16 %v647_v44, %v646_v48  ;;  %v606_v55 = vadd.f32 %v1032_v45, %v928_v37 }
 0x1ac   : > { %v597_v49 = vpop.f32.mrf.mxu1 }
 0x1ad   : > { %v660_v50 = vpack.c.bf16 %v645_v47, %v644_v46  ;;  %v598_v53 = vadd.f32 %v928_v37, %v597_v49  ;;  %v650_v62 = vmax.f32 %v606_v55, 0.0 }
 0x1ae   : > { %v1033_v52 = vpop.f32.mrf.mxu1 }
 0x1af   : > { %v609_v54 = vadd.f32 %v1033_v52, %v928_v37  ;;  %1058 = vmatprep.mubr.bf16.mxu0 %v660_v50  ;;  %v648_v60 = vmax.f32 %v598_v53, 0.0 }
 0x1b0   : > { %v600_v56 = vpop.f32.mrf.mxu1  ;;  %1059 = vmatmul.mubr.bf16.vlgmr.msra.gmra.mxu0 %v661_v51 }
 0x1b1   : > { %v601_v57 = vadd.f32 %v928_v37, %v600_v56  ;;  %v651_v58 = vmax.f32 %v609_v54, 0.0 }
 0x1b2   : > { %v1036_v59 = vpop.f32.mrf.mxu1 }
 0x1b3   : > { %v649_v61 = vmax.f32 %v601_v57, 0.0  ;;  %v663_v1 = vpack.c.bf16 %v651_v58, %v650_v62  ;;  %v622_v5 = vadd.f32 %v1036_v59, %v928_v37 }
 0x1b4   : > { %v613_v63 = vpop.f32.mrf.mxu1 }
 0x1b5   : > { %v662_v0 = vpack.c.bf16 %v649_v61, %v648_v60  ;;  %v614_v3 = vadd.f32 %v928_v37, %v613_v63  ;;  %v654_v12 = vmax.f32 %v622_v5, 0.0 }
 0x1b6   : > { %v1037_v2 = vpop.f32.mrf.mxu1 }
 0x1b7   : > { %v625_v4 = vadd.f32 %v1037_v2, %v928_v37  ;;  %1062 = vmatprep.mubr.bf16.mxu0 %v662_v0  ;;  %v652_v10 = vmax.f32 %v614_v3, 0.0 }
 0x1b8   : > { %v616_v6 = vpop.f32.mrf.mxu1  ;;  %1063 = vmatmul.mubr.bf16.gmra.mxu0 %v663_v1 }
 0x1b9   : > { %v617_v7 = vadd.f32 %v928_v37, %v616_v6  ;;  %v655_v8 = vmax.f32 %v625_v4, 0.0 }
 0x1ba   : > { %v1040_v9 = vpop.f32.mrf.mxu1 }
 0x1bb   : > { %v653_v11 = vmax.f32 %v617_v7, 0.0  ;;  %v665_v15 = vpack.c.bf16 %v655_v8, %v654_v12  ;;  %v638_v19 = vadd.f32 %v1040_v9, %v928_v37 }
 0x1bc   : > { %v629_v13 = vpop.f32.mrf.mxu1 }
 0x1bd   : > { %v664_v14 = vpack.c.bf16 %v653_v11, %v652_v10  ;;  %v630_v17 = vadd.f32 %v928_v37, %v629_v13  ;;  %v658_v25 = vmax.f32 %v638_v19, 0.0 }
 0x1be   : > { %v1041_v16 = vpop.f32.mrf.mxu1 }
 0x1bf   : > { %v641_v18 = vadd.f32 %v1041_v16, %v928_v37  ;;  %1066 = vmatprep.mubr.bf16.mxu0 %v664_v14  ;;  %v656_v23 = vmax.f32 %v630_v17, 0.0 }
 0x1c0   : > { %v632_v20 = vpop.f32.mrf.mxu1  ;;  %1067 = vmatmul.mubr.bf16.gmra.mxu0 %v665_v15 }
 0x1c1   : > { %v633_v21 = vadd.f32 %v928_v37, %v632_v20  ;;  %v659_v22 = vmax.f32 %v641_v18, 0.0 }
 0x1c3   : > { %v657_v24 = vmax.f32 %v633_v21, 0.0  ;;  %v667_v27 = vpack.c.bf16 %v659_v22, %v658_v25 }
 0x1c5   : > { %v666_v26 = vpack.c.bf16 %v657_v24, %v656_v23 }
 0x1c7   : > { %1070 = vmatprep.mubr.bf16.mxu0 %v666_v26 }
 0x1c8   : > { %1071 = vmatmul.mubr.bf16.gmra.mxu0 %v667_v27 }
 0x270   : > { %v1060_v29 = vpop.f32.mrf.mxu0 }
 0x271   : > { %v782_v30 = vadd.f32 %v1060_v29, %v937_v28 }
 0x272   : > { %v773_v31 = vpop.f32.mrf.mxu0 }
 0x273   : > { %838 = vst [vmem:[%s1258_s11 + $0x10] sm:$0xff] %v782_v30  ;;  %v774_v32 = vadd.f32 %v937_v28, %v773_v31 }
 0x274   : > { %v1061_v33 = vpop.f32.mrf.mxu0 }
 0x275   : > { %836 = vst [vmem:[%s1258_s11] sm:$0xff] %v774_v32  ;;  %v785_v34 = vadd.f32 %v1061_v33, %v937_v28 }
 0x276   : > { %v776_v35 = vpop.f32.mrf.mxu0 }
 0x277   : > { %839 = vst [vmem:[%s1258_s11 + $0x18] sm:$0xff] %v785_v34  ;;  %v777_v36 = vadd.f32 %v937_v28, %v776_v35 }
 0x278   : > { %v1064_v37 = vpop.f32.mrf.mxu0 }
 0x279   : > { %837 = vst [vmem:[%s1258_s11 + $0x8] sm:$0xff] %v777_v36  ;;  %v798_v38 = vadd.f32 %v1064_v37, %v937_v28 }
 0x27a   : > { %v789_v39 = vpop.f32.mrf.mxu0 }
 0x27b   : > { %842 = vst [vmem:[%s1258_s11 + $0x30] sm:$0xff] %v798_v38  ;;  %v790_v40 = vadd.f32 %v937_v28, %v789_v39 }
 0x27c   : > { %v1065_v41 = vpop.f32.mrf.mxu0 }
 0x27d   : > { %840 = vst [vmem:[%s1258_s11 + $0x20] sm:$0xff] %v790_v40  ;;  %v801_v42 = vadd.f32 %v1065_v41, %v937_v28 }
 0x27e   : > { %v792_v43 = vpop.f32.mrf.mxu0 }
 0x27f   : > { %843 = vst [vmem:[%s1258_s11 + $0x38] sm:$0xff] %v801_v42  ;;  %v793_v44 = vadd.f32 %v937_v28, %v792_v43 }
 0x280   : > { %v1068_v45 = vpop.f32.mrf.mxu0 }
 0x281   : > { %841 = vst [vmem:[%s1258_s11 + $0x28] sm:$0xff] %v793_v44  ;;  %v814_v46 = vadd.f32 %v1068_v45, %v937_v28 }
 0x282   : > { %v805_v47 = vpop.f32.mrf.mxu0 }
 0x283   : > { %846 = vst [vmem:[%s1258_s11 + $0x50] sm:$0xff] %v814_v46  ;;  %v806_v48 = vadd.f32 %v937_v28, %v805_v47 }
 0x284   : > { %v1069_v49 = vpop.f32.mrf.mxu0 }
 0x285   : > { %844 = vst [vmem:[%s1258_s11 + $0x40] sm:$0xff] %v806_v48  ;;  %v817_v50 = vadd.f32 %v1069_v49, %v937_v28 }
 0x286   : > { %v808_v51 = vpop.f32.mrf.mxu0 }
 0x287   : > { %847 = vst [vmem:[%s1258_s11 + $0x58] sm:$0xff] %v817_v50  ;;  %v809_v52 = vadd.f32 %v937_v28, %v808_v51 }
 0x288   : > { %v1072_v53 = vpop.f32.mrf.mxu0 }
 0x289   : > { %845 = vst [vmem:[%s1258_s11 + $0x48] sm:$0xff] %v809_v52  ;;  %v830_v54 = vadd.f32 %v1072_v53, %v937_v28 }
 0x28a   : > { %v821_v55 = vpop.f32.mrf.mxu0 }
 0x28b   : > { %850 = vst [vmem:[%s1258_s11 + $0x70] sm:$0xff] %v830_v54  ;;  %v822_v56 = vadd.f32 %v937_v28, %v821_v55 }
 0x28c   : > { %v1073_v57 = vpop.f32.mrf.mxu0 }
 0x28d   : > { %848 = vst [vmem:[%s1258_s11 + $0x60] sm:$0xff] %v822_v56  ;;  %v833_v58 = vadd.f32 %v1073_v57, %v937_v28 }
 0x28e   : > { %v824_v59 = vpop.f32.mrf.mxu0 }
 0x28f   : > { %851 = vst [vmem:[%s1258_s11 + $0x78] sm:$0xff] %v833_v58  ;;  %v825_v60 = vadd.f32 %v937_v28, %v824_v59 }
 0x291   : > { %849 = vst [vmem:[%s1258_s11 + $0x68] sm:$0xff] %v825_v60 }
 0x292 PF: > { %s17_s24 = sadd.s32 1, %s1106_s24  }
 0x293   : > { %p14_p4 = scmp.ge.s32.totalorder %s17_s24, 4  }
 0x295   :  { %16 = sbr.rel (!%p14_p4) target bundleno = 1 (0x1), region = 78 }

</bundles_post_ra>
